<compile_context>
chip_gen: v5e
topology: v5e:2x2
jax: 0.10.0
libtpu: 0.0.40
codegen_flags: <defaults>
</compile_context>

<pallas_src>
import functools

import jax
import jax.numpy as jnp
from jax.experimental import pallas as pl
from jax.experimental.pallas import tpu as pltpu


def _attention_pad_kernel(params_ref,
                          row_now_ref, row_past_t_ref,
                          col_now_t_ref, col_past_ref,
                          cor_now_ref, cor_past_t_ref,
                          row_out_ref, col_out_ref, cor_out_ref):
    # Fused per-channel scalars for this channel block, each (C_blk, 1, 1).
    tp = params_ref[0]   # theTa.weight * phi.weight
    gw = params_ref[1]   # g.weight * w.weight
    wb = params_ref[2]   # w.bias

    def bmm(a, b):
        # Standard batched matmul on the MXU: (C, A, K) x (C, K, B) -> (C, A, B)
        return jax.lax.dot_general(
            a, b, (((2,), (1,)), ((0,), (0,))),
            preferred_element_type=jnp.float32)

    def attend_natural(now, past_t):
        # now: (C, M, N), past_t: (C, N, M)  ->  out: (C, M, N)   (lane-dense)
        # fT[c, j, i] = f[c, i, j] = tp * sum_m now[c, m, i] * past[c, m, j]
        fT = bmm(past_t * tp, now)                                 # (C, N, N)
        fT = fT - jnp.max(fT, axis=1, keepdims=True)               # softmax over j
        e = jnp.exp(fT)
        pT = e * pl.reciprocal(jnp.sum(e, axis=1, keepdims=True), approx=True)
        # out[c, m, i] = sum_j (g*w) * now[c, m, j] * p[c, i, j] + b
        return bmm(now * gw, pT) + wb

    def attend_transposed(now_t, past):
        # now_t: (C, N, M), past: (C, M, N)  ->  out^T: (C, N, M)  (lane-dense)
        f = bmm(now_t, past * tp)                                  # (C, N, N)
        f = f - jnp.max(f, axis=2, keepdims=True)                  # softmax over j
        e = jnp.exp(f)
        p = e * pl.reciprocal(jnp.sum(e, axis=2, keepdims=True), approx=True)
        return bmm(p, now_t * gw) + wb

    row_out_ref[...] = attend_natural(row_now_ref[...], row_past_t_ref[...])
    cor_out_ref[...] = attend_natural(cor_now_ref[...], cor_past_t_ref[...])
    col_out_ref[...] = attend_transposed(col_now_t_ref[...], col_past_ref[...])


def _pick_channel_block(B, C, H, W, s, vmem_budget_bytes=32 * 1024 * 1024):
    """Largest channel-block divisor of C that keeps the VMEM working set small."""
    slab = 2 * s * W + 2 * s * H + 4 * s * s            # one now/past/out slab / channel
    per_ch_bytes = 4 * (
        4 * slab                                        # double-buffered now + past inputs
        + 2 * slab                                      # double-buffered outputs
        + 2 * slab                                      # scaled operand temporaries
        + 3 * (W * W + 4 * s * s + 16 * s * s))         # f / exp / p softmax intermediates
    cap = max(1, vmem_budget_bytes // max(per_ch_bytes, 1))
    if B == 1 and C >= 2:
        cap = min(cap, C // 2)    # keep >= 2 grid steps so both v7x TensorCores get work
    c_blk = 1
    for d in range(1, C + 1):
        if C % d == 0 and d <= cap:
            c_blk = d
    return c_blk


def learning_padding_by_attention(x, theTa_w, phi_w, g_w, w_w, w_b, stride=1):
    s = stride
    B, C, H, W = x.shape
    assert H >= 2 * s and W >= 2 * s, "need H, W >= 2 * stride"
    x = x.astype(jnp.float32)

    # Border slabs (exactly the torch slices / cats).
    row_now = jnp.concatenate([x[:, :, 0:s], x[:, :, H - s:]], axis=2)                  # (B,C,2s,W)
    row_past = jnp.concatenate([x[:, :, s:2 * s], x[:, :, H - 2 * s:H - s]], axis=2)    # (B,C,2s,W)
    col_now = jnp.concatenate([x[:, :, :, 0:s], x[:, :, :, W - s:]], axis=3)            # (B,C,H,2s)
    col_past = jnp.concatenate([x[:, :, :, s:2 * s], x[:, :, :, W - 2 * s:W - s]], axis=3)
    cor_now = jnp.concatenate([x[:, :, 0:s, 0:s], x[:, :, 0:s, W - s:],
                               x[:, :, H - s:, 0:s], x[:, :, H - s:, W - s:]], axis=3)  # (B,C,s,4s)
    cor_past = jnp.concatenate(
        [x[:, :, s:2 * s, s:2 * s], x[:, :, s:2 * s, W - 2 * s:W - s],
         x[:, :, H - 2 * s:H - s, s:2 * s], x[:, :, H - 2 * s:H - s, W - 2 * s:W - s]],
        axis=3)                                                                         # (B,C,s,4s)

    # Transpose only the small operands needed so that both in-kernel contractions
    # are standard batched matmuls AND every kernel output is written lane-dense.
    row_past_t = jnp.swapaxes(row_past, 2, 3)   # (B,C,W,2s)
    col_now_t = jnp.swapaxes(col_now, 2, 3)     # (B,C,2s,H)
    cor_past_t = jnp.swapaxes(cor_past, 2, 3)   # (B,C,4s,s)

    # Fused per-channel scalars of the four depthwise 1x1 convs.
    params = jnp.stack([theTa_w * phi_w, g_w * w_w, w_b], axis=0)
    params = params.astype(jnp.float32).reshape(3, C, 1, 1)

    c_blk = _pick_channel_block(B, C, H, W, s)
    grid = (B, C // c_blk)

    def dspec(m, n):
        return pl.BlockSpec((None, c_blk, m, n), lambda b, c: (b, c, 0, 0))

    out_shapes = (
        jax.ShapeDtypeStruct((B, C, 2 * s, W), jnp.float32),   # row, natural layout
        jax.ShapeDtypeStruct((B, C, 2 * s, H), jnp.float32),   # col, transposed (lane-dense)
        jax.ShapeDtypeStruct((B, C, s, 4 * s), jnp.float32),   # corner, natural layout
    )

    flops = 2 * B * C * (4 * s * W * W + 8 * s * s * H + 32 * s ** 3)
    transcendentals = B * C * (W * W + 4 * s * s + 16 * s * s)
    bytes_accessed = 4 * (3 * B * C * (2 * s * W + 2 * s * H + 4 * s * s) + 3 * C)

    row, col_t, corner = pl.pallas_call(
        _attention_pad_kernel,
        out_shape=out_shapes,
        grid=grid,
        in_specs=[
            pl.BlockSpec((3, c_blk, 1, 1), lambda b, c: (0, c, 0, 0)),   # fused scalars
            dspec(2 * s, W),      # row_now
            dspec(W, 2 * s),      # row_past_t
            dspec(2 * s, H),      # col_now_t
            dspec(H, 2 * s),      # col_past
            dspec(s, 4 * s),      # cor_now
            dspec(4 * s, s),      # cor_past_t
        ],
        out_specs=(
            dspec(2 * s, W),
            dspec(2 * s, H),
            dspec(s, 4 * s),
        ),
        compiler_params=pltpu.CompilerParams(
            dimension_semantics=("parallel", "parallel"),
            vmem_limit_bytes=48 * 1024 * 1024),
        cost_estimate=pl.CostEstimate(
            flops=flops, transcendentals=transcendentals,
            bytes_accessed=bytes_accessed),
    )(params, row_now, row_past_t, col_now_t, col_past, cor_now, cor_past_t)

    col = jnp.swapaxes(col_t, 2, 3)   # (B,C,H,2s)

    # Assemble the padded output exactly as the torch module does.
    x_pad = jnp.concatenate([row[:, :, 0:s], x, row[:, :, s:]], axis=2)                           # (B,C,H+2s,W)
    col_full = jnp.concatenate([corner[:, :, :, 0:2 * s], col, corner[:, :, :, 2 * s:]], axis=2)  # (B,C,H+2s,2s)
    return jnp.concatenate([col_full[:, :, :, 0:s], x_pad, col_full[:, :, :, s:]], axis=3)        # (B,C,H+2s,W+2s)


def reference_forward(x, theTa_w, phi_w, g_w, w_w, w_b, stride=1):
    """Pure-JAX mirror of the PyTorch forward (for correctness checking)."""
    s = stride
    B, C, H, W = x.shape

    def dw(t, w, b=None):  # depthwise 1x1 conv
        y = t * w[None, :, None, None]
        if b is not None:
            y = y + b[None, :, None, None]
        return y

    row_now = jnp.concatenate([x[:, :, 0:s], x[:, :, H - s:]], axis=2)
    row_past = jnp.concatenate([x[:, :, s:2 * s], x[:, :, H - 2 * s:H - s]], axis=2)
    col_now = jnp.concatenate([x[:, :, :, 0:s], x[:, :, :, W - s:]], axis=3)
    col_past = jnp.concatenate([x[:, :, :, s:2 * s], x[:, :, :, W - 2 * s:W - s]], axis=3)
    cor_now = jnp.concatenate([x[:, :, 0:s, 0:s], x[:, :, 0:s, W - s:],
                               x[:, :, H - s:, 0:s], x[:, :, H - s:, W - s:]], axis=3)
    cor_past = jnp.concatenate(
        [x[:, :, s:2 * s, s:2 * s], x[:, :, s:2 * s, W - 2 * s:W - s],
         x[:, :, H - 2 * s:H - s, s:2 * s], x[:, :, H - 2 * s:H - s, W - 2 * s:W - s]],
        axis=3)

    g_row = jnp.swapaxes(dw(row_now, g_w), 2, 3)
    g_col = jnp.swapaxes(dw(col_now, g_w), 2, 3)
    g_cor = jnp.swapaxes(dw(cor_now, g_w), 2, 3)
    theta_row = jnp.swapaxes(dw(row_now, theTa_w), 2, 3)
    theta_col = jnp.swapaxes(dw(col_now, theTa_w), 2, 3)
    theta_cor = jnp.swapaxes(dw(cor_now, theTa_w), 2, 3)
    phi_row = dw(row_past, phi_w)
    phi_col = dw(col_past, phi_w)
    phi_cor = dw(cor_past, phi_w)

    f_row = jax.nn.softmax(jnp.matmul(theta_row, phi_row), axis=-1)
    f_col = jax.nn.softmax(jnp.matmul(theta_col, phi_col), axis=-1)
    f_cor = jax.nn.softmax(jnp.matmul(theta_cor, phi_cor), axis=-1)

    row = dw(jnp.swapaxes(jnp.matmul(f_row, g_row), 2, 3), w_w, w_b)
    col = dw(jnp.swapaxes(jnp.matmul(f_col, g_col), 2, 3), w_w, w_b)
    corner = dw(jnp.swapaxes(jnp.matmul(f_cor, g_cor), 2, 3), w_w, w_b)

    x_pad = jnp.concatenate([row[:, :, 0:s], x, row[:, :, s:]], axis=2)
    col_full = jnp.concatenate([corner[:, :, :, 0:2 * s], col, corner[:, :, :, 2 * s:]], axis=2)
    return jnp.concatenate([col_full[:, :, :, 0:s], x_pad, col_full[:, :, :, s:]], axis=3)


if __name__ == "__main__":
    B, C, H, W = 2, 4, 16, 16
    stride = 1

    key = jax.random.PRNGKey(0)
    kx, k1, k2, k3, k4, k5 = jax.random.split(key, 6)
    x = jax.random.normal(kx, (B, C, H, W), dtype=jnp.float32)

    # NOTE: the PyTorch __init__ zero-inits every conv weight (which would make
    # the learned padding trivially zero).  Use deterministic random parameters
    # of the same shapes so the attention path is actually exercised.
    theTa_w = 0.5 * jax.random.normal(k1, (C,), dtype=jnp.float32)  # theTa.weight (C,1,1,1) -> (C,)
    phi_w = 0.5 * jax.random.normal(k2, (C,), dtype=jnp.float32)    # phi.weight
    g_w = 0.5 * jax.random.normal(k3, (C,), dtype=jnp.float32)      # g.weight
    w_w = 0.5 * jax.random.normal(k4, (C,), dtype=jnp.float32)      # w.weight
    w_b = 0.1 * jax.random.normal(k5, (C,), dtype=jnp.float32)      # w.bias

    fwd = jax.jit(functools.partial(learning_padding_by_attention, stride=stride))
    out = jax.block_until_ready(fwd(x, theTa_w, phi_w, g_w, w_w, w_b))

    ref = reference_forward(x, theTa_w, phi_w, g_w, w_w, w_b, stride=stride)
    assert out.shape == (B, C, H + 2 * stride, W + 2 * stride), out.shape
    err = float(jnp.max(jnp.abs(out - ref)))
    # Tolerance covers the EUP approx-reciprocal used for the softmax normalization.
    assert err < 1e-2, err

    print("KERNEL_OK")
</pallas_src>

<mosaic_0001>
module attributes {stable_mosaic.version = 11 : i64} {
  func.func @_attention_pad_kernel(%arg0: i32, %arg1: i32, %arg2: memref<3x4x1x1xf32, #tpu.memory_space<vmem>>, %arg3: memref<1x4x2x16xf32, #tpu.memory_space<vmem>>, %arg4: memref<1x4x16x2xf32, #tpu.memory_space<vmem>>, %arg5: memref<1x4x2x16xf32, #tpu.memory_space<vmem>>, %arg6: memref<1x4x16x2xf32, #tpu.memory_space<vmem>>, %arg7: memref<1x4x1x4xf32, #tpu.memory_space<vmem>>, %arg8: memref<1x4x4x1xf32, #tpu.memory_space<vmem>>, %arg9: memref<1x4x2x16xf32, #tpu.memory_space<vmem>>, %arg10: memref<1x4x2x16xf32, #tpu.memory_space<vmem>>, %arg11: memref<1x4x1x4xf32, #tpu.memory_space<vmem>>) attributes {dimension_semantics = [#tpu.dimension_semantics<parallel>, #tpu.dimension_semantics<parallel>], iteration_bounds = array<i64: 2, 1>, scalar_prefetch = 0 : i64, scratch_operands = 0 : i64, tpu.core_type = #tpu.core_type<tc>, window_params = [{transform_indices = @transform_0, window_bounds = array<i64: 3, 4, 1, 1>}, {transform_indices = @transform_1, window_bounds = array<i64: 1, 4, 2, 16>}, {transform_indices = @transform_2, window_bounds = array<i64: 1, 4, 16, 2>}, {transform_indices = @transform_3, window_bounds = array<i64: 1, 4, 2, 16>}, {transform_indices = @transform_4, window_bounds = array<i64: 1, 4, 16, 2>}, {transform_indices = @transform_5, window_bounds = array<i64: 1, 4, 1, 4>}, {transform_indices = @transform_6, window_bounds = array<i64: 1, 4, 4, 1>}, {transform_indices = @transform_7, window_bounds = array<i64: 1, 4, 2, 16>}, {transform_indices = @transform_8, window_bounds = array<i64: 1, 4, 2, 16>}, {transform_indices = @transform_9, window_bounds = array<i64: 1, 4, 1, 4>}]} {
    %c0 = arith.constant 0 : index
    %c0_0 = arith.constant 0 : index
    %c0_1 = arith.constant 0 : index
    %c0_2 = arith.constant 0 : index
    %0 = vector.load %arg2[%c0, %c0_0, %c0_1, %c0_2] : memref<3x4x1x1xf32, #tpu.memory_space<vmem>>, vector<1x4x1x1xf32>
    %1 = vector.shape_cast %0 : vector<1x4x1x1xf32> to vector<4x1x1xf32>
    %c1 = arith.constant 1 : index
    %c0_3 = arith.constant 0 : index
    %c0_4 = arith.constant 0 : index
    %c0_5 = arith.constant 0 : index
    %2 = vector.load %arg2[%c1, %c0_3, %c0_4, %c0_5] : memref<3x4x1x1xf32, #tpu.memory_space<vmem>>, vector<1x4x1x1xf32>
    %3 = vector.shape_cast %2 : vector<1x4x1x1xf32> to vector<4x1x1xf32>
    %c2 = arith.constant 2 : index
    %c0_6 = arith.constant 0 : index
    %c0_7 = arith.constant 0 : index
    %c0_8 = arith.constant 0 : index
    %4 = vector.load %arg2[%c2, %c0_6, %c0_7, %c0_8] : memref<3x4x1x1xf32, #tpu.memory_space<vmem>>, vector<1x4x1x1xf32>
    %5 = vector.shape_cast %4 : vector<1x4x1x1xf32> to vector<4x1x1xf32>
    %c0_9 = arith.constant 0 : index
    %c0_10 = arith.constant 0 : index
    %c0_11 = arith.constant 0 : index
    %c0_12 = arith.constant 0 : index
    %6 = vector.load %arg3[%c0_9, %c0_10, %c0_11, %c0_12] : memref<1x4x2x16xf32, #tpu.memory_space<vmem>>, vector<1x4x2x16xf32>
    %7 = vector.shape_cast %6 : vector<1x4x2x16xf32> to vector<4x2x16xf32>
    %c0_13 = arith.constant 0 : index
    %c0_14 = arith.constant 0 : index
    %c0_15 = arith.constant 0 : index
    %c0_16 = arith.constant 0 : index
    %8 = vector.load %arg4[%c0_13, %c0_14, %c0_15, %c0_16] : memref<1x4x16x2xf32, #tpu.memory_space<vmem>>, vector<1x4x16x2xf32>
    %9 = vector.shape_cast %8 : vector<1x4x16x2xf32> to vector<4x16x2xf32>
    %10 = vector.broadcast %1 : vector<4x1x1xf32> to vector<4x16x2xf32>
    %11 = arith.mulf %9, %10 : vector<4x16x2xf32>
    %cst = arith.constant dense<0.000000e+00> : vector<4x16x16xf32>
    %12 = tpu.matmul %11, %7, %cst {dimension_numbers = #tpu.dot_dimension_numbers<[2], [1], [1], [2], [0, 0, 0, 1, 1, 2], [0], [0]>} : vector<4x16x2xf32>, vector<4x2x16xf32>, vector<4x16x16xf32> -> vector<4x16x16xf32>
    %cst_17 = arith.constant dense<0xFF800000> : vector<4x16xf32>
    %13 = vector.multi_reduction <maximumf>, %12, %cst_17 [1] : vector<4x16x16xf32> to vector<4x16xf32>
    %14 = vector.shape_cast %13 : vector<4x16xf32> to vector<4x1x16xf32>
    %15 = vector.broadcast %14 : vector<4x1x16xf32> to vector<4x16x16xf32>
    %16 = arith.subf %12, %15 : vector<4x16x16xf32>
    %17 = math.exp %16 : vector<4x16x16xf32>
    %cst_18 = arith.constant dense<0.000000e+00> : vector<4x16xf32>
    %18 = vector.multi_reduction <add>, %17, %cst_18 [1] : vector<4x16x16xf32> to vector<4x16xf32>
    %19 = vector.shape_cast %18 : vector<4x16xf32> to vector<4x1x16xf32>
    %20 = tpu.reciprocal %19 {approx = true} : vector<4x1x16xf32> -> vector<4x1x16xf32>
    %21 = vector.broadcast %20 : vector<4x1x16xf32> to vector<4x16x16xf32>
    %22 = arith.mulf %17, %21 : vector<4x16x16xf32>
    %23 = vector.broadcast %3 : vector<4x1x1xf32> to vector<4x2x16xf32>
    %24 = arith.mulf %7, %23 : vector<4x2x16xf32>
    %cst_19 = arith.constant dense<0.000000e+00> : vector<4x2x16xf32>
    %25 = tpu.matmul %24, %22, %cst_19 {dimension_numbers = #tpu.dot_dimension_numbers<[2], [1], [1], [2], [0, 0, 0, 1, 1, 2], [0], [0]>} : vector<4x2x16xf32>, vector<4x16x16xf32>, vector<4x2x16xf32> -> vector<4x2x16xf32>
    %26 = vector.broadcast %5 : vector<4x1x1xf32> to vector<4x2x16xf32>
    %27 = arith.addf %25, %26 : vector<4x2x16xf32>
    %c0_20 = arith.constant 0 : index
    %c0_21 = arith.constant 0 : index
    %c0_22 = arith.constant 0 : index
    %c0_23 = arith.constant 0 : index
    %28 = vector.load %arg9[%c0_20, %c0_21, %c0_22, %c0_23] : memref<1x4x2x16xf32, #tpu.memory_space<vmem>>, vector<1x4x2x16xf32>
    %29 = vector.shape_cast %28 : vector<1x4x2x16xf32> to vector<4x2x16xf32>
    %30 = vector.shape_cast %27 : vector<4x2x16xf32> to vector<1x4x2x16xf32>
    tpu.vector_store %arg9[%c0_20, %c0_21, %c0_22, %c0_23], %30 {strides = array<i32>} : memref<1x4x2x16xf32, #tpu.memory_space<vmem>>, vector<1x4x2x16xf32>,
    %c0_24 = arith.constant 0 : index
    %c0_25 = arith.constant 0 : index
    %c0_26 = arith.constant 0 : index
    %c0_27 = arith.constant 0 : index
    %31 = vector.load %arg7[%c0_24, %c0_25, %c0_26, %c0_27] : memref<1x4x1x4xf32, #tpu.memory_space<vmem>>, vector<1x4x1x4xf32>
    %32 = vector.shape_cast %31 : vector<1x4x1x4xf32> to vector<4x1x4xf32>
    %c0_28 = arith.constant 0 : index
    %c0_29 = arith.constant 0 : index
    %c0_30 = arith.constant 0 : index
    %c0_31 = arith.constant 0 : index
    %33 = vector.load %arg8[%c0_28, %c0_29, %c0_30, %c0_31] : memref<1x4x4x1xf32, #tpu.memory_space<vmem>>, vector<1x4x4x1xf32>
    %34 = vector.shape_cast %33 : vector<1x4x4x1xf32> to vector<4x4x1xf32>
    %35 = vector.broadcast %1 : vector<4x1x1xf32> to vector<4x4x1xf32>
    %36 = arith.mulf %34, %35 : vector<4x4x1xf32>
    %cst_32 = arith.constant dense<0.000000e+00> : vector<4x4x4xf32>
    %37 = tpu.matmul %36, %32, %cst_32 {dimension_numbers = #tpu.dot_dimension_numbers<[2], [1], [1], [2], [0, 0, 0, 1, 1, 2], [0], [0]>} : vector<4x4x1xf32>, vector<4x1x4xf32>, vector<4x4x4xf32> -> vector<4x4x4xf32>
    %cst_33 = arith.constant dense<0xFF800000> : vector<4x4xf32>
    %38 = vector.multi_reduction <maximumf>, %37, %cst_33 [1] : vector<4x4x4xf32> to vector<4x4xf32>
    %39 = vector.shape_cast %38 : vector<4x4xf32> to vector<4x1x4xf32>
    %40 = vector.broadcast %39 : vector<4x1x4xf32> to vector<4x4x4xf32>
    %41 = arith.subf %37, %40 : vector<4x4x4xf32>
    %42 = math.exp %41 : vector<4x4x4xf32>
    %cst_34 = arith.constant dense<0.000000e+00> : vector<4x4xf32>
    %43 = vector.multi_reduction <add>, %42, %cst_34 [1] : vector<4x4x4xf32> to vector<4x4xf32>
    %44 = vector.shape_cast %43 : vector<4x4xf32> to vector<4x1x4xf32>
    %45 = tpu.reciprocal %44 {approx = true} : vector<4x1x4xf32> -> vector<4x1x4xf32>
    %46 = vector.broadcast %45 : vector<4x1x4xf32> to vector<4x4x4xf32>
    %47 = arith.mulf %42, %46 : vector<4x4x4xf32>
    %48 = vector.broadcast %3 : vector<4x1x1xf32> to vector<4x1x4xf32>
    %49 = arith.mulf %32, %48 : vector<4x1x4xf32>
    %cst_35 = arith.constant dense<0.000000e+00> : vector<4x1x4xf32>
    %50 = tpu.matmul %49, %47, %cst_35 {dimension_numbers = #tpu.dot_dimension_numbers<[2], [1], [1], [2], [0, 0, 0, 1, 1, 2], [0], [0]>} : vector<4x1x4xf32>, vector<4x4x4xf32>, vector<4x1x4xf32> -> vector<4x1x4xf32>
    %51 = vector.broadcast %5 : vector<4x1x1xf32> to vector<4x1x4xf32>
    %52 = arith.addf %50, %51 : vector<4x1x4xf32>
    %c0_36 = arith.constant 0 : index
    %c0_37 = arith.constant 0 : index
    %c0_38 = arith.constant 0 : index
    %c0_39 = arith.constant 0 : index
    %53 = vector.load %arg11[%c0_36, %c0_37, %c0_38, %c0_39] : memref<1x4x1x4xf32, #tpu.memory_space<vmem>>, vector<1x4x1x4xf32>
    %54 = vector.shape_cast %53 : vector<1x4x1x4xf32> to vector<4x1x4xf32>
    %55 = vector.shape_cast %52 : vector<4x1x4xf32> to vector<1x4x1x4xf32>
    tpu.vector_store %arg11[%c0_36, %c0_37, %c0_38, %c0_39], %55 {strides = array<i32>} : memref<1x4x1x4xf32, #tpu.memory_space<vmem>>, vector<1x4x1x4xf32>,
    %c0_40 = arith.constant 0 : index
    %c0_41 = arith.constant 0 : index
    %c0_42 = arith.constant 0 : index
    %c0_43 = arith.constant 0 : index
    %56 = vector.load %arg5[%c0_40, %c0_41, %c0_42, %c0_43] : memref<1x4x2x16xf32, #tpu.memory_space<vmem>>, vector<1x4x2x16xf32>
    %57 = vector.shape_cast %56 : vector<1x4x2x16xf32> to vector<4x2x16xf32>
    %c0_44 = arith.constant 0 : index
    %c0_45 = arith.constant 0 : index
    %c0_46 = arith.constant 0 : index
    %c0_47 = arith.constant 0 : index
    %58 = vector.load %arg6[%c0_44, %c0_45, %c0_46, %c0_47] : memref<1x4x16x2xf32, #tpu.memory_space<vmem>>, vector<1x4x16x2xf32>
    %59 = vector.shape_cast %58 : vector<1x4x16x2xf32> to vector<4x16x2xf32>
    %60 = vector.broadcast %1 : vector<4x1x1xf32> to vector<4x16x2xf32>
    %61 = arith.mulf %59, %60 : vector<4x16x2xf32>
    %cst_48 = arith.constant dense<0.000000e+00> : vector<4x2x2xf32>
    %62 = tpu.matmul %57, %61, %cst_48 {dimension_numbers = #tpu.dot_dimension_numbers<[2], [1], [1], [2], [0, 0, 0, 1, 1, 2], [0], [0]>} : vector<4x2x16xf32>, vector<4x16x2xf32>, vector<4x2x2xf32> -> vector<4x2x2xf32>
    %cst_49 = arith.constant dense<0xFF800000> : vector<4x2xf32>
    %63 = vector.multi_reduction <maximumf>, %62, %cst_49 [2] : vector<4x2x2xf32> to vector<4x2xf32>
    %64 = vector.shape_cast %63 : vector<4x2xf32> to vector<4x2x1xf32>
    %65 = vector.broadcast %64 : vector<4x2x1xf32> to vector<4x2x2xf32>
    %66 = arith.subf %62, %65 : vector<4x2x2xf32>
    %67 = math.exp %66 : vector<4x2x2xf32>
    %cst_50 = arith.constant dense<0.000000e+00> : vector<4x2xf32>
    %68 = vector.multi_reduction <add>, %67, %cst_50 [2] : vector<4x2x2xf32> to vector<4x2xf32>
    %69 = vector.shape_cast %68 : vector<4x2xf32> to vector<4x2x1xf32>
    %70 = tpu.reciprocal %69 {approx = true} : vector<4x2x1xf32> -> vector<4x2x1xf32>
    %71 = vector.broadcast %70 : vector<4x2x1xf32> to vector<4x2x2xf32>
    %72 = arith.mulf %67, %71 : vector<4x2x2xf32>
    %73 = vector.broadcast %3 : vector<4x1x1xf32> to vector<4x2x16xf32>
    %74 = arith.mulf %57, %73 : vector<4x2x16xf32>
    %cst_51 = arith.constant dense<0.000000e+00> : vector<4x2x16xf32>
    %75 = tpu.matmul %72, %74, %cst_51 {dimension_numbers = #tpu.dot_dimension_numbers<[2], [1], [1], [2], [0, 0, 0, 1, 1, 2], [0], [0]>} : vector<4x2x2xf32>, vector<4x2x16xf32>, vector<4x2x16xf32> -> vector<4x2x16xf32>
    %76 = vector.broadcast %5 : vector<4x1x1xf32> to vector<4x2x16xf32>
    %77 = arith.addf %75, %76 : vector<4x2x16xf32>
    %c0_52 = arith.constant 0 : index
    %c0_53 = arith.constant 0 : index
    %c0_54 = arith.constant 0 : index
    %c0_55 = arith.constant 0 : index
    %78 = vector.load %arg10[%c0_52, %c0_53, %c0_54, %c0_55] : memref<1x4x2x16xf32, #tpu.memory_space<vmem>>, vector<1x4x2x16xf32>
    %79 = vector.shape_cast %78 : vector<1x4x2x16xf32> to vector<4x2x16xf32>
    %80 = vector.shape_cast %77 : vector<4x2x16xf32> to vector<1x4x2x16xf32>
    tpu.vector_store %arg10[%c0_52, %c0_53, %c0_54, %c0_55], %80 {strides = array<i32>} : memref<1x4x2x16xf32, #tpu.memory_space<vmem>>, vector<1x4x2x16xf32>,
    return
  }
  func.func @transform_0(%arg0: i32, %arg1: i32) -> (i32, i32, i32, i32) {
    %c0_i32 = arith.constant 0 : i32
    %c0_i32_0 = arith.constant 0 : i32
    %c0_i32_1 = arith.constant 0 : i32
    %c0_i32_2 = arith.constant 0 : i32
    return %c0_i32, %arg1, %c0_i32_0, %c0_i32_1 : i32, i32, i32, i32
  }
  func.func @transform_1(%arg0: i32, %arg1: i32) -> (i32, i32, i32, i32) {
    %c0_i32 = arith.constant 0 : i32
    %c0_i32_0 = arith.constant 0 : i32
    %c0_i32_1 = arith.constant 0 : i32
    return %arg0, %arg1, %c0_i32, %c0_i32_0 : i32, i32, i32, i32
  }
  func.func @transform_2(%arg0: i32, %arg1: i32) -> (i32, i32, i32, i32) {
    %c0_i32 = arith.constant 0 : i32
    %c0_i32_0 = arith.constant 0 : i32
    %c0_i32_1 = arith.constant 0 : i32
    return %arg0, %arg1, %c0_i32, %c0_i32_0 : i32, i32, i32, i32
  }
  func.func @transform_3(%arg0: i32, %arg1: i32) -> (i32, i32, i32, i32) {
    %c0_i32 = arith.constant 0 : i32
    %c0_i32_0 = arith.constant 0 : i32
    %c0_i32_1 = arith.constant 0 : i32
    return %arg0, %arg1, %c0_i32, %c0_i32_0 : i32, i32, i32, i32
  }
  func.func @transform_4(%arg0: i32, %arg1: i32) -> (i32, i32, i32, i32) {
    %c0_i32 = arith.constant 0 : i32
    %c0_i32_0 = arith.constant 0 : i32
    %c0_i32_1 = arith.constant 0 : i32
    return %arg0, %arg1, %c0_i32, %c0_i32_0 : i32, i32, i32, i32
  }
  func.func @transform_5(%arg0: i32, %arg1: i32) -> (i32, i32, i32, i32) {
    %c0_i32 = arith.constant 0 : i32
    %c0_i32_0 = arith.constant 0 : i32
    %c0_i32_1 = arith.constant 0 : i32
    return %arg0, %arg1, %c0_i32, %c0_i32_0 : i32, i32, i32, i32
  }
  func.func @transform_6(%arg0: i32, %arg1: i32) -> (i32, i32, i32, i32) {
    %c0_i32 = arith.constant 0 : i32
    %c0_i32_0 = arith.constant 0 : i32
    %c0_i32_1 = arith.constant 0 : i32
    return %arg0, %arg1, %c0_i32, %c0_i32_0 : i32, i32, i32, i32
  }
  func.func @transform_7(%arg0: i32, %arg1: i32) -> (i32, i32, i32, i32) {
    %c0_i32 = arith.constant 0 : i32
    %c0_i32_0 = arith.constant 0 : i32
    %c0_i32_1 = arith.constant 0 : i32
    return %arg0, %arg1, %c0_i32, %c0_i32_0 : i32, i32, i32, i32
  }
  func.func @transform_8(%arg0: i32, %arg1: i32) -> (i32, i32, i32, i32) {
    %c0_i32 = arith.constant 0 : i32
    %c0_i32_0 = arith.constant 0 : i32
    %c0_i32_1 = arith.constant 0 : i32
    return %arg0, %arg1, %c0_i32, %c0_i32_0 : i32, i32, i32, i32
  }
  func.func @transform_9(%arg0: i32, %arg1: i32) -> (i32, i32, i32, i32) {
    %c0_i32 = arith.constant 0 : i32
    %c0_i32_0 = arith.constant 0 : i32
    %c0_i32_1 = arith.constant 0 : i32
    return %arg0, %arg1, %c0_i32, %c0_i32_0 : i32, i32, i32, i32
  }
}

</mosaic_0001>

<bundles_post_ra>
// kernel: learning_padding_by_attention.1
= control target key start
LH: loop header
LB: loop body
LE: loop exit
PB: predicated region body
PF: predicated region fallthrough
CT: control target
= control target key end

     0   :  { %s2228_s30 = smov 0   ;;  %s2230_s10 = smov 0   ;;  %s2614_s0 = inlined_call_operand.vmem [shape: f32[3,4,1,1], index: 0, kind: input, shape index: {}]   ;;  %s2615_s1 = inlined_call_operand.vmem [shape: f32[2,4,2,16], index: 1, kind: input, shape index: {}]   ;;  %s2616_s2 = inlined_call_operand.vmem [shape: f32[2,4,16,2], index: 2, kind: input, shape index: {}]   ;;  %s2617_s3 = inlined_call_operand.vmem [shape: f32[2,4,2,16], index: 3, kind: input, shape index: {}]   ;;  %s2618_s4 = inlined_call_operand.vmem [shape: f32[2,4,16,2], index: 4, kind: input, shape index: {}]   ;;  %s2619_s5 = inlined_call_operand.vmem [shape: f32[2,4,1,4], index: 5, kind: input, shape index: {}]   ;;  %s2620_s6 = inlined_call_operand.vmem [shape: f32[2,4,4,1], index: 6, kind: input, shape index: {}]   ;;  %s2621_s7 = inlined_call_operand.vmem [shape: f32[2,4,2,16], index: 7, kind: output, shape index: {0}]   ;;  %s2622_s8 = inlined_call_operand.vmem [shape: f32[2,4,2,16], index: 8, kind: output, shape index: {1}]   ;;  %s2623_s9 = inlined_call_operand.vmem [shape: f32[2,4,1,4], index: 9, kind: output, shape index: {2}]  }
   0x1   :  { %s2232_s11 = smov 0  }
   0x2 LB: > { %s32_s12 = sadd.s32 1, %s2171_s10  ;;  %p1979_p0 = scmp.ge.s32.totalorder %s2175_s11, 1  ;;  %s2175_s11 = sphi %s2232_s11, %s20_s11   ;;  %s2171_s10 = sphi %s2230_s10, %s2625_s10   ;;  %s2167_s30 = sphi %s2228_s30, %s2624_s30  }
   0x3   : > { %p34_p1 = scmp.ge.s32.totalorder %s32_s12, 2  ;;  %p413_p2 = scmp.lt.s32.totalorder %s2175_s11, 3 }
   0x5   : > { %s2627_s12 = smov (%p34_p1, %s32_s12), 0  ;;  %p414_p3 = pnand %p1979_p0, %p413_p2 }
   0x6   : > { %p530_p4 = scmp.lt.s32.totalorder (!%p414_p3), %s2167_s30, 1 }
   0x7   : > { %417 = sbr.rel (%p414_p3) target bundleno = 1049 (0x419), region = 48 }
   0xc   : > { %v2085_v0 = vld [vmem:[%s2614_s0 + $0x2] ss:$0 sm:$0xff]  ;;  %v2177_v1 = vmov 0   ;;  %v2086_v2 = vld [vmem:[%s2614_s0] ss:$0 sm:$0xff]  ;;  %s2629_s30 = smov (!%p530_p4, %s2167_s30), 1 }
   0xd   : > { %2083 = vset.pattern.permute.xlu1 %v2177_v1  ;;  %2082 = vset.pattern.permute.xlu0 %v2177_v1  ;;  %s2054_s17 = sshll.u32 %s2629_s30, 4  ;;  %v2087_v3 = vld [vmem:[%s2614_s0 + $0x3] ss:$0 sm:$0xff]  ;;  %v2088_v4 = vld [vmem:[%s2614_s0 + $0x1] ss:$0 sm:$0xff]  ;;  %s2285_s16 = sshll.u32 %s2629_s30, 3 }
   0xe   : > { %662 = vperm.xlu0 %2082, %v2085_v0   ;;  %2084 = vset.pattern.permute.xlu2 %v2177_v1  ;;  %s588_s20 = scalar_lea.vmem %s2620_s6, %s2054_s17  ;;  %v2089_v13 = vld [vmem:[%s2614_s0 + $0x4] ss:$0 sm:$0xff]  ;;  %v2090_v14 = vld [vmem:[%s2614_s0 + $0x5] ss:$0 sm:$0xff]  ;;  %v1999_v15 = vld [vmem:[%s2614_s0 + $0x7] sm:$0x1]  ;;  %s537_s19 = scalar_lea.vmem %s2615_s1, %s2285_s16 }
   0xf   : > { %654 = vperm.xlu1 %2083, %v2086_v2   ;;  %v1071_v5 = vld [vmem:[%s588_s20 + $0x8] sm:$0xf]  ;;  %v1069_v6 = vld [vmem:[%s588_s20] sm:$0xf]  ;;  %v1072_v7 = vld [vmem:[%s588_s20 + $0xc] sm:$0xf]  ;;  %s2477_s25 = scalar_lea.vmem %s2617_s3, %s2285_s16  ;;  %s2571_s15 = scalar_lea.vmem %s2621_s7, %s2285_s16 }
  0x10   : > { %v2264_v8 = vmul.f32 %v2085_v0, %v1071_v5  ;;  %v2266_v9 = vmul.f32 %v2086_v2, %v1069_v6  ;;  %v2268_v10 = vmul.f32 %v2087_v3, %v1072_v7  ;;  %v1070_v11 = vld [vmem:[%s588_s20 + $0x4] sm:$0xf]  ;;  %v2291_v17 = vld [vmem:[%s537_s19] sm:$0x3]  ;;  %vm684_vm0 = vcmask 1041408   ;;  %s2051_s20 = sshll.u32 %s2629_s30, 6  ;;  %s608_s17 = scalar_lea.vmem %s2622_s8, %s2285_s16 }
  0x11   : > { %v2270_v12 = vmul.f32 %v2088_v4, %v1070_v11  ;;  %v1996_v16 = vld [vmem:[%s2614_s0 + $0x4] sm:$0x1]  ;;  %2004 = vmatpush.msk.msra.mxu0 %vm684_vm0, %v2291_v17  ;;  %v2299_v19 = vld [vmem:[%s537_s19 + $0x2] sm:$0x3]  ;;  %v2301_v20 = vld [vmem:[%s537_s19 + $0x6] sm:$0x3]  ;;  %s2311_s23 = scalar_lea.vmem %s2618_s4, %s2051_s20  ;;  %s2316_s26 = scalar_lea.vmem %s2616_s2, %s2051_s20 }
  0x12   : > { %v2293_v18 = vld [vmem:[%s537_s19 + $0x4] sm:$0x3]  ;;  %2007 = vmatpush.msk.msra.mxu1 %vm684_vm0, %v2299_v19  ;;  %2013 = vmatpush.msk.msra.mxu3 %vm684_vm0, %v2301_v20  ;;  %v2092_v21 = vld [vmem:[%s2614_s0 + $0x6] ss:$0 sm:$0xff]  ;;  %v1428_v22 = vld [vmem:[%s2311_s23 + $0x28] sm:$0xff]  ;;  %vm677_vm1 = vcmask 15360  }
  0x13   : > { %2010 = vmatpush.msk.msra.mxu2 %vm684_vm0, %v2293_v18  ;;  %v641_v23 = vld [vmem:[%s2316_s26 + $0x20] sm:$0xff]  ;;  %933 = vperm.xlu2 %2084, %v2092_v21   ;;  %v1424_v25 = vld [vmem:[%s2311_s23 + $0x8] sm:$0xff]  ;;  %v1430_v39 = vld [vmem:[%s2311_s23 + $0x38] sm:$0xff]  ;;  %vm807_vm2 = vcmask 130048   ;;  %s1988_s19 = sshll.u32 %s2629_s30, 2  ;;  %vm1085_vm3 = vcmask 1040384  }
  0x14   : > { %v1427_v24 = vld [vmem:[%s2311_s23 + $0x20] sm:$0xff]  ;;  %v638_v37 = vld [vmem:[%s2316_s26 + $0x8] sm:$0xff]  ;;  %v643_v40 = vld [vmem:[%s2316_s26 + $0x30] sm:$0xff]  ;;  %s2406_s22 = scalar_lea.vmem %s2619_s5, %s1988_s19  ;;  %vm1081_vm4 = vcmask 7168   ;;  %vm1187_vm5 = vcmask 27648   ;;  %vm1312_vm6 = vcmask 1043456   ;;  %s2561_s29 = scalar_lea.vmem %s2623_s9, %s1988_s19 }
  0x15   : > { %v637_v26 = vld [vmem:[%s2316_s26] sm:$0xff]  ;;  %v642_v38 = vld [vmem:[%s2316_s26 + $0x28] sm:$0xff]  ;;  %v1429_v41 = vld [vmem:[%s2311_s23 + $0x30] sm:$0xff]  ;;  %vm1308_vm7 = vcmask 31744   ;;  %vm1531_vm8 = vcmask 9216   ;;  %vm1414_vm9 = vcmask 24576  }
  0x16   : > { %666 = vperm.xlu0 %2082, %v2087_v3   ;;  %v1423_v27 = vld [vmem:[%s2311_s23] sm:$0xff]  ;;  %v1426_v42 = vld [vmem:[%s2311_s23 + $0x18] sm:$0xff]  ;;  %v639_v43 = vld [vmem:[%s2316_s26 + $0x10] sm:$0xff]  ;;  %vm1060_vm10 = vcmask 123904  }
  0x17   : > { %658 = vperm.xlu1 %2083, %v2088_v4   ;;  %v2091_v33 = vld [vmem:[%s2614_s0 + $0x7] ss:$0 sm:$0xff]  ;;  %v1425_v44 = vld [vmem:[%s2311_s23 + $0x10] sm:$0xff]  ;;  %v1998_v55 = vld [vmem:[%s2614_s0 + $0x6] sm:$0x1] }
  0x18   : > { %v640_v56 = vld [vmem:[%s2316_s26 + $0x18] sm:$0xff]  ;;  %v1997_v60 = vld [vmem:[%s2614_s0 + $0x5] sm:$0x1] }
  0x19   : > { %v644_v57 = vld [vmem:[%s2316_s26 + $0x38] sm:$0xff] }
  0x1b   : > { %937 = vperm.xlu2 %2084, %v2091_v33  }
  0x1e   : > { %925 = vperm.xlu0 %2082, %v2089_v13  }
  0x1f   : > { %929 = vperm.xlu1 %2083, %v2090_v14  }
  0x23   : > { %1275 = vperm.xlu2 %2084, %v1998_v55  }
  0x26   : > { %1280 = vperm.xlu0 %2082, %v1999_v15  }
  0x27   : > { %1265 = vperm.xlu1 %2083, %v1996_v16  }
  0x2b   : > { %1270 = vperm.xlu2 %2084, %v1997_v60  }
  0x80   : > { %v663_v28 = vpop.permute.xlu0 %662 }
  0x81   : > { %v2327_v29 = vmul.f32 %v1428_v22, %v663_v28  ;;  %v655_v30 = vpop.permute.xlu1 %654  ;;  %v673_v31 = vmul.f32 %v663_v28, %v641_v23  ;;  %v2329_v32 = vmul.f32 %v1427_v24, %v663_v28  ;;  %v674_v49 = vmul.f32 %v663_v28, %v642_v38 }
  0x82   : > { %v2334_v34 = vmul.f32 %v1424_v25, %v655_v30  ;;  %v669_v35 = vmul.f32 %v655_v30, %v637_v26  ;;  %v2336_v36 = vmul.f32 %v1423_v27, %v655_v30  ;;  %v670_v46 = vmul.f32 %v655_v30, %v638_v37 }
  0x83   : > { %2011 = vmatmul.msk.f32.vlgmr.msra.gmra.mxu2 %vm677_vm1, %v673_v31 }
  0x84   : > { %2005 = vmatmul.msk.f32.vlgmr.msra.gmra.mxu0 %vm677_vm1, %v669_v35 }
  0x88   : > { %v667_v45 = vpop.permute.xlu0 %666 }
  0x89   : > { %v2348_v47 = vmul.f32 %v1430_v39, %v667_v45  ;;  %v659_v48 = vpop.permute.xlu1 %658  ;;  %v675_v50 = vmul.f32 %v667_v45, %v643_v40  ;;  %v2350_v51 = vmul.f32 %v1429_v41, %v667_v45  ;;  %v676_v59 = vmul.f32 %v667_v45, %v644_v57 }
  0x8a   : > { %v2352_v52 = vmul.f32 %v1426_v42, %v659_v48  ;;  %v671_v53 = vmul.f32 %v659_v48, %v639_v43  ;;  %v2354_v54 = vmul.f32 %v1425_v44, %v659_v48  ;;  %v672_v58 = vmul.f32 %v659_v48, %v640_v56 }
  0x8b   : > { %2012 = vmatmul.msk.f32.gmra.mxu2 %vm677_vm1, %v674_v49  ;;  %2014 = vmatmul.msk.f32.vlgmr.msra.gmra.mxu3 %vm677_vm1, %v675_v50 }
  0x8c   : > { %2006 = vmatmul.msk.f32.gmra.mxu0 %vm677_vm1, %v670_v46  ;;  %2008 = vmatmul.msk.f32.vlgmr.msra.gmra.mxu1 %vm677_vm1, %v671_v53 }
  0x93   : > { %2015 = vmatmul.msk.f32.gmra.mxu3 %vm677_vm1, %v676_v59 }
  0x94   : > { %2009 = vmatmul.msk.f32.gmra.mxu1 %vm677_vm1, %v672_v58 }
 0x101   : > { %v705_v61 = vpop.f32.mrf.mxu0 }
 0x102   : > { %v808_v63 = vsel %vm807_vm2, %v705_v61, -inf }
 0x106   : > { %v769_v62 = vpop.f32.mrf.mxu2 }
 0x107   : > { %v826_v7 = vsel %vm807_vm2, %v769_v62, -inf }
 0x109   : > { %v708_v0 = vpop.f32.mrf.mxu0  ;;  %v737_v1 = vpop.f32.mrf.mxu1 }
 0x10a   : > { %v809_v2 = vsel %vm807_vm2, %v708_v0, -inf  ;;  %v817_v14 = vsel %vm807_vm2, %v737_v1, -inf }
 0x10b   : > { %v810_v3 = vmax.f32 %v808_v63, %v809_v2 }
 0x10d   : > { %v811_v4 = vrot.slane %v810_v3, 4 }
 0x10e   : > { %v772_v5 = vpop.f32.mrf.mxu2  ;;  %v801_v6 = vpop.f32.mrf.mxu3 }
 0x10f   : > { %v812_v11 = vmax.f32 %v810_v3, %v811_v4  ;;  %v827_v13 = vsel %vm807_vm2, %v772_v5, -inf  ;;  %v835_v35 = vsel %vm807_vm2, %v801_v6, -inf }
 0x110   : > { %v828_v15 = vmax.f32 %v826_v7, %v827_v13 }
 0x111   : > { %v813_v16 = vrot.slane %v812_v11, 2  ;;  %v740_v21 = vpop.f32.mrf.mxu1 }
 0x112   : > { %v829_v22 = vrot.slane %v828_v15, 4  ;;  %v818_v23 = vsel %vm807_vm2, %v740_v21, -inf }
 0x113   : > { %v814_v24 = vmax.f32 %v812_v11, %v813_v16  ;;  %v819_v25 = vmax.f32 %v817_v14, %v818_v23 }
 0x114   : > { %v830_v26 = vmax.f32 %v828_v15, %v829_v22 }
 0x115   : > { %v815_v27 = vrot.slane %v814_v24, 1  ;;  %v820_v28 = vrot.slane %v819_v25, 4 }
 0x116   : > { %v831_v30 = vrot.slane %v830_v26, 2  ;;  %v804_v31 = vpop.f32.mrf.mxu3 }
 0x117   : > { %v816_v33 = vmax.f32 %v814_v24, %v815_v27  ;;  %v821_v37 = vmax.f32 %v819_v25, %v820_v28  ;;  %v836_v38 = vsel %vm807_vm2, %v804_v31, -inf }
 0x118   : > { %v832_v39 = vmax.f32 %v830_v26, %v831_v30  ;;  %v837_v40 = vmax.f32 %v835_v35, %v836_v38 }
 0x119   : > { %v844_v41 = vsub.f32 %v705_v61, %v816_v33  ;;  %v845_v42 = vsub.f32 %v708_v0, %v816_v33  ;;  %v822_v43 = vrot.slane %v821_v37, 2 }
 0x11a   : > { %v833_v44 = vrot.slane %v832_v39, 1  ;;  %v838_v45 = vrot.slane %v837_v40, 4 }
 0x11b   : > { %v852_v46 = vmul.f32 1.442695, %v844_v41  ;;  %v854_v48 = vmul.f32 1.442695, %v845_v42  ;;  %v823_v49 = vmax.f32 %v821_v37, %v822_v43 }
 0x11c   : > { %v834_v50 = vmax.f32 %v832_v39, %v833_v44  ;;  %v839_v53 = vmax.f32 %v837_v40, %v838_v45 }
 0x11d   : > { %2097 = vpow2.f32 %v852_v46  ;;  %v824_v55 = vrot.slane %v823_v49, 1 }
 0x11e   : > { %2099 = vpow2.f32 %v854_v48  ;;  %v848_v56 = vsub.f32 %v769_v62, %v834_v50  ;;  %v849_v57 = vsub.f32 %v772_v5, %v834_v50  ;;  %v840_v58 = vrot.slane %v839_v53, 2 }
 0x11f   : > { %v825_v59 = vmax.f32 %v823_v49, %v824_v55 }
 0x120   : > { %v860_v60 = vmul.f32 1.442695, %v848_v56  ;;  %v862_v63 = vmul.f32 1.442695, %v849_v57  ;;  %v841_v2 = vmax.f32 %v839_v53, %v840_v58 }
 0x121   : > { %v846_v61 = vsub.f32 %v737_v1, %v825_v59  ;;  %v847_v0 = vsub.f32 %v740_v21, %v825_v59 }
 0x122   : > { %2101 = vpow2.f32 %v860_v60  ;;  %v842_v3 = vrot.slane %v841_v2, 1 }
 0x123   : > { %v2378_v4 = vpop.eup %2097  ;;  %2103 = vpow2.f32 %v862_v63  ;;  %v856_v7 = vmul.f32 1.442695, %v846_v61  ;;  %v858_v11 = vmul.f32 1.442695, %v847_v0 }
 0x124   : > { %v2100_v13 = vpop.eup %2099  ;;  %v868_v14 = vsel %vm807_vm2, %v2378_v4, 0.0  ;;  %v843_v62 = vmax.f32 %v841_v2, %v842_v3 }
 0x125   : > { %v869_v5 = vsel %vm807_vm2, %v2100_v13, 0.0  ;;  %2105 = vpow2.f32 %v856_v7 }
 0x126   : > { %v870_v15 = vadd.f32 %v869_v5, %v868_v14  ;;  %2107 = vpow2.f32 %v858_v11  ;;  %v850_v16 = vsub.f32 %v801_v6, %v843_v62  ;;  %v851_v1 = vsub.f32 %v804_v31, %v843_v62  ;;  %v2399_v11 = vpop.permute.xlu0 %925 }
 0x128   : > { %v2383_v21 = vpop.eup %2101  ;;  %v871_v22 = vrot.slane %v870_v15, 4  ;;  %v864_v23 = vmul.f32 1.442695, %v850_v16  ;;  %v866_v24 = vmul.f32 1.442695, %v851_v1  ;;  %v940_v16 = vmul.f32 %v2399_v11, %v2291_v17 }
 0x129   : > { %v2104_v25 = vpop.eup %2103  ;;  %v886_v26 = vsel %vm807_vm2, %v2383_v21, 0.0 }
 0x12a   : > { %v872_v27 = vadd.f32 %v871_v22, %v870_v15  ;;  %v887_v28 = vsel %vm807_vm2, %v2104_v25, 0.0  ;;  %2109 = vpow2.f32 %v864_v23  ;;  %v2412_v22 = vld [vmem:[%s2406_s22] sm:$0x1]  ;;  %v2414_v23 = vpop.permute.xlu2 %933 }
 0x12b   : > { %v2388_v30 = vpop.eup %2105  ;;  %v888_v33 = vadd.f32 %v887_v28, %v886_v26  ;;  %2111 = vpow2.f32 %v866_v24  ;;  %v942_v26 = vmul.f32 %v2414_v23, %v2293_v18  ;;  %v2422_v28 = vpop.permute.xlu1 %929 }
 0x12c   : > { %v2108_v35 = vpop.eup %2107  ;;  %v877_v6 = vsel %vm807_vm2, %v2388_v30, 0.0  ;;  %v873_v31 = vrot.slane %v872_v27, 2 }
 0x12d   : > { %v889_v37 = vrot.slane %v888_v33, 4  ;;  %v878_v38 = vsel %vm807_vm2, %v2108_v35, 0.0 }
 0x12e   : > { %v879_v39 = vadd.f32 %v878_v38, %v877_v6  ;;  %v874_v40 = vadd.f32 %v873_v31, %v872_v27 }
 0x12f   : > { %v890_v41 = vadd.f32 %v889_v37, %v888_v33  ;;  %v2425_v33 = vld [vmem:[%s2406_s22 + $0x2] sm:$0x1]  ;;  %v2447_v37 = vld [vmem:[%s2406_s22 + $0x3] sm:$0x1] }
 0x130   : > { %v2393_v42 = vpop.eup %2109  ;;  %v880_v43 = vrot.slane %v879_v39, 4  ;;  %v875_v44 = vrot.slane %v874_v40, 1 }
 0x131   : > { %v2112_v45 = vpop.eup %2111  ;;  %v895_v46 = vsel %vm807_vm2, %v2393_v42, 0.0  ;;  %v891_v48 = vrot.slane %v890_v41, 2 }
 0x132   : > { %v881_v49 = vadd.f32 %v880_v43, %v879_v39  ;;  %v896_v50 = vsel %vm807_vm2, %v2112_v45, 0.0  ;;  %v876_v53 = vadd.f32 %v875_v44, %v874_v40 }
 0x133   : > { %v897_v55 = vadd.f32 %v896_v50, %v895_v46  ;;  %v892_v56 = vadd.f32 %v891_v48, %v890_v41 }
 0x134   : > { %2113 = vrcp.f32 %v876_v53  ;;  %v882_v57 = vrot.slane %v881_v49, 2 }
 0x135   : > { %v898_v58 = vrot.slane %v897_v55, 4  ;;  %v893_v59 = vrot.slane %v892_v56, 1 }
 0x136   : > { %v883_v60 = vadd.f32 %v882_v57, %v881_v49 }
 0x137   : > { %v899_v63 = vadd.f32 %v898_v58, %v897_v55  ;;  %v894_v2 = vadd.f32 %v893_v59, %v892_v56 }
 0x138   : > { %v884_v61 = vrot.slane %v883_v60, 1 }
 0x139   : > { %2115 = vrcp.f32 %v894_v2  ;;  %v900_v0 = vrot.slane %v899_v63, 2 }
 0x13a   : > { %v2114_v3 = vpop.eup %2113  ;;  %v885_v7 = vadd.f32 %v884_v61, %v883_v60 }
 0x13b   : > { %v909_v14 = vmul.f32 %v2114_v3, %v2100_v13  ;;  %v901_v62 = vadd.f32 %v900_v0, %v899_v63  ;;  %v908_v5 = vmul.f32 %v2114_v3, %v2378_v4 }
 0x13c   : > { %2117 = vrcp.f32 %v885_v7 }
 0x13d   : > { %985 = vmatpush.msrb.mxu0 %v909_v14  ;;  %v902_v15 = vrot.slane %v901_v62, 1 }
 0x13f   : > { %v2116_v1 = vpop.eup %2115  ;;  %986 = vmatpush.msrb.mxu0 %v908_v5  ;;  %v903_v13 = vadd.f32 %v902_v15, %v901_v62 }
 0x140   : > { %2016 = vmatmul.msk.f32.vlgmr.msrb.gmra.mxu0 %vm807_vm2, %v940_v16  ;;  %v913_v24 = vmul.f32 %v2116_v1, %v2104_v25  ;;  %v912_v4 = vmul.f32 %v2116_v1, %v2383_v21  ;;  %v941_v25 = vmul.f32 %v2422_v28, %v2299_v19 }
 0x141   : > { %2020 = vmatpush.msk.msra.mxu0 %vm1085_vm3, %v2412_v22  ;;  %2119 = vrcp.f32 %v903_v13 }
 0x142   : > { %v2118_v17 = vpop.eup %2117  ;;  %1031 = vmatpush.msrb.mxu2 %v913_v24 }
 0x143   : > { %v911_v27 = vmul.f32 %v2118_v17, %v2108_v35  ;;  %v910_v18 = vmul.f32 %v2118_v17, %v2388_v30  ;;  %v2437_v35 = vld [vmem:[%s2406_s22 + $0x1] sm:$0x1]  ;;  %v2441_v30 = vpop.permute.xlu2 %937 }
 0x144   : > { %1032 = vmatpush.msrb.mxu2 %v912_v4  ;;  %v943_v31 = vmul.f32 %v2441_v30, %v2301_v20 }
 0x145   : > { %1008 = vmatpush.msrb.mxu1 %v911_v27  ;;  %2018 = vmatmul.msk.f32.vlgmr.msrb.gmra.mxu2 %vm807_vm2, %v942_v26 }
 0x146   : > { %2024 = vmatpush.msk.msra.mxu2 %vm1085_vm3, %v2425_v33 }
 0x147   : > { %v2120_v21 = vpop.eup %2119  ;;  %1009 = vmatpush.msrb.mxu1 %v910_v18 }
 0x148   : > { %2017 = vmatmul.msk.f32.vlgmr.msrb.gmra.mxu1 %vm807_vm2, %v941_v25  ;;  %2021 = vmatmul.msk.f32.vlgmr.msra.gmra.mxu0 %vm1081_vm4, %v2266_v9  ;;  %v915_v6 = vmul.f32 %v2120_v21, %v2112_v45  ;;  %v914_v19 = vmul.f32 %v2120_v21, %v2393_v42 }
 0x149   : > { %2022 = vmatpush.msk.msra.mxu1 %vm1085_vm3, %v2437_v35 }
 0x14a   : > { %1054 = vmatpush.msrb.mxu3 %v915_v6 }
 0x14c   : > { %1055 = vmatpush.msrb.mxu3 %v914_v19 }
 0x14d   : > { %2019 = vmatmul.msk.f32.vlgmr.msrb.gmra.mxu3 %vm807_vm2, %v943_v31  ;;  %2025 = vmatmul.msk.f32.vlgmr.msra.gmra.mxu2 %vm1081_vm4, %v2264_v8 }
 0x14e   : > { %2026 = vmatpush.msk.msra.mxu3 %vm1085_vm3, %v2447_v37 }
 0x150   : > { %2023 = vmatmul.msk.f32.vlgmr.msra.gmra.mxu1 %vm1081_vm4, %v2270_v12 }
 0x155   : > { %2027 = vmatmul.msk.f32.vlgmr.msra.gmra.mxu3 %vm1081_vm4, %v2268_v10 }
 0x1bd   : > { %v2458_v9 = vpop.f32.mrf.mxu0 }
 0x1c5   : > { %v2460_v20 = vpop.f32.mrf.mxu1  ;;  %v1106_v38 = vpop.f32.mrf.mxu0 }
 0x1c6   : > { %v1188_v39 = vsel %vm1187_vm5, %v1106_v38, -inf }
 0x1c7   : > { %v1189_v40 = vrot.slane %v1188_v39, 4 }
 0x1c8   : > { %v2463_v41 = vpop.f32.mrf.mxu2 }
 0x1c9   : > { %v1190_v8 = vmax.f32 %v1188_v39, %v1189_v40 }
 0x1cb   : > { %v1191_v42 = vrot.slane %v1190_v8, 2 }
 0x1cd   : > { %v1192_v43 = vmax.f32 %v1190_v8, %v1191_v42  ;;  %v1132_v44 = vpop.f32.mrf.mxu1 }
 0x1ce   : > { %v1195_v12 = vsel %vm1187_vm5, %v1132_v44, -inf }
 0x1cf   : > { %v1193_v45 = vrot.slane %v1192_v43, 1  ;;  %v1196_v46 = vrot.slane %v1195_v12, 4 }
 0x1d0   : > { %v2466_v10 = vpop.f32.mrf.mxu3  ;;  %v1158_v48 = vpop.f32.mrf.mxu2 }
 0x1d1   : > { %v1194_v49 = vmax.f32 %v1192_v43, %v1193_v45  ;;  %v1197_v50 = vmax.f32 %v1195_v12, %v1196_v46  ;;  %v1202_v53 = vsel %vm1187_vm5, %v1158_v48, -inf }
 0x1d2   : > { %v1203_v55 = vrot.slane %v1202_v53, 4 }
 0x1d3   : > { %v1216_v56 = vsub.f32 %v1106_v38, %v1194_v49  ;;  %v1198_v57 = vrot.slane %v1197_v50, 2 }
 0x1d4   : > { %v1204_v58 = vmax.f32 %v1202_v53, %v1203_v55  ;;  %v1266_v53 = vpop.permute.xlu1 %1265 }
 0x1d5   : > { %v1220_v59 = vmul.f32 1.442695, %v1216_v56  ;;  %v1199_v60 = vmax.f32 %v1197_v50, %v1198_v57 }
 0x1d6   : > { %v1205_v63 = vrot.slane %v1204_v58, 2 }
 0x1d7   : > { %2121 = vpow2.f32 %v1220_v59  ;;  %v1200_v2 = vrot.slane %v1199_v60, 1 }
 0x1d8   : > { %v1206_v61 = vmax.f32 %v1204_v58, %v1205_v63  ;;  %v1184_v0 = vpop.f32.mrf.mxu3  ;;  %v1268_v58 = vperm.slane %v1266_v53, 0 }
 0x1d9   : > { %v1201_v3 = vmax.f32 %v1199_v60, %v1200_v2  ;;  %v1209_v7 = vsel %vm1187_vm5, %v1184_v0, -inf }
 0x1da   : > { %v1207_v14 = vrot.slane %v1206_v61, 1  ;;  %v1210_v62 = vrot.slane %v1209_v7, 4 }
 0x1db   : > { %v1217_v5 = vsub.f32 %v1132_v44, %v1201_v3 }
 0x1dc   : > { %v1208_v15 = vmax.f32 %v1206_v61, %v1207_v14  ;;  %v1211_v16 = vmax.f32 %v1209_v7, %v1210_v62  ;;  %v1284_v62 = vmul.f32 %v1268_v58, %v2412_v22 }
 0x1dd   : > { %v2122_v1 = vpop.eup %2121  ;;  %v1222_v13 = vmul.f32 1.442695, %v1217_v5  ;;  %v1419_v5 = vld [vmem:[%s2477_s25] sm:$0x3] }
 0x1de   : > { %v1228_v24 = vsel %vm1187_vm5, %v2122_v1, 0.0  ;;  %v1218_v26 = vsub.f32 %v1158_v48, %v1208_v15  ;;  %v1212_v17 = vrot.slane %v1211_v16, 2  ;;  %v1276_v48 = vpop.permute.xlu2 %1275 }
 0x1df   : > { %v1229_v4 = vrot.slane %v1228_v24, 4  ;;  %2123 = vpow2.f32 %v1222_v13 }
 0x1e0   : > { %v1224_v27 = vmul.f32 1.442695, %v1218_v26  ;;  %v1213_v18 = vmax.f32 %v1211_v16, %v1212_v17 }
 0x1e1   : > { %v1230_v25 = vadd.f32 %v1229_v4, %v1228_v24  ;;  %v1278_v4 = vperm.slane %v1276_v48, 0 }
 0x1e2   : > { %2125 = vpow2.f32 %v1224_v27  ;;  %v1214_v21 = vrot.slane %v1213_v18, 1 }
 0x1e3   : > { %v1231_v6 = vrot.slane %v1230_v25, 2 }
 0x1e4   : > { %v1215_v19 = vmax.f32 %v1213_v18, %v1214_v21 }
 0x1e5   : > { %v2124_v31 = vpop.eup %2123  ;;  %v1232_v38 = vadd.f32 %v1231_v6, %v1230_v25  ;;  %v1420_v6 = vld [vmem:[%s2477_s25 + $0x2] sm:$0x3] }
 0x1e6   : > { %v1235_v39 = vsel %vm1187_vm5, %v2124_v31, 0.0  ;;  %v1219_v40 = vsub.f32 %v1184_v0, %v1215_v19  ;;  %v1271_v15 = vpop.permute.xlu2 %1270 }
 0x1e7   : > { %v1233_v8 = vrot.slane %v1232_v38, 1  ;;  %v1236_v42 = vrot.slane %v1235_v39, 4  ;;  %v1273_v26 = vperm.slane %v1271_v15, 0  ;;  %v2094_v15 = vld [vmem:[%s2614_s0 + $0x9] ss:$0 sm:$0xff] }
 0x1e8   : > { %v2126_v43 = vpop.eup %2125  ;;  %v1226_v44 = vmul.f32 1.442695, %v1219_v40 }
 0x1e9   : > { %v1234_v12 = vadd.f32 %v1233_v8, %v1232_v38  ;;  %v1237_v45 = vadd.f32 %v1236_v42, %v1235_v39  ;;  %v1242_v46 = vsel %vm1187_vm5, %v2126_v43, 0.0  ;;  %v1285_v25 = vmul.f32 %v1273_v26, %v2437_v35  ;;  %v1421_v35 = vld [vmem:[%s2477_s25 + $0x4] sm:$0x3]  ;;  %v2095_v26 = vld [vmem:[%s2614_s0 + $0xb] ss:$0 sm:$0xff] }
 0x1ea   : > { %v1243_v49 = vrot.slane %v1242_v46, 4  ;;  %2127 = vpow2.f32 %v1226_v44 }
 0x1eb   : > { %2129 = vrcp.f32 %v1234_v12  ;;  %v1238_v50 = vrot.slane %v1237_v45, 2 }
 0x1ec   : > { %v1244_v55 = vadd.f32 %v1243_v49, %v1242_v46 }
 0x1ed   : > { %v1239_v56 = vadd.f32 %v1238_v50, %v1237_v45 }
 0x1ee   : > { %v1245_v57 = vrot.slane %v1244_v55, 2 }
 0x1ef   : > { %v1240_v59 = vrot.slane %v1239_v56, 1 }
 0x1f0   : > { %v2128_v60 = vpop.eup %2127  ;;  %v1246_v63 = vadd.f32 %v1245_v57, %v1244_v55 }
 0x1f1   : > { %v2130_v2 = vpop.eup %2129  ;;  %v1241_v61 = vadd.f32 %v1240_v59, %v1239_v56  ;;  %v1249_v0 = vsel %vm1187_vm5, %v2128_v60, 0.0 }
 0x1f2   : > { %v1260_v3 = vmul.f32 %v2130_v2, %v2122_v1  ;;  %v1247_v7 = vrot.slane %v1246_v63, 1  ;;  %v1250_v14 = vrot.slane %v1249_v0, 4  ;;  %v1576_v1 = vmul.f32 %v1419_v5, %v2399_v11 }
 0x1f3   : > { %2131 = vrcp.f32 %v1241_v61  ;;  %v1577_v11 = vmul.f32 %v1420_v6, %v2422_v28 }
 0x1f4   : > { %v1248_v16 = vadd.f32 %v1247_v7, %v1246_v63  ;;  %v1251_v13 = vadd.f32 %v1250_v14, %v1249_v0  ;;  %2028 = vmatpush.msk.msrb.mxu0 %vm1312_vm6, %v1260_v3  ;;  %v2000_v7 = vld [vmem:[%s2614_s0 + $0x8] sm:$0x1] }
 0x1f5   : > { %2029 = vmatmul.msk.f32.vlgmr.msrb.gmra.mxu0 %vm1308_vm7, %v1284_v62 }
 0x1f6   : > { %2133 = vrcp.f32 %v1248_v16  ;;  %v1252_v24 = vrot.slane %v1251_v13, 2  ;;  %1456 = vmatpush.msra.mxu0 %v2334_v34  ;;  %v2001_v16 = vld [vmem:[%s2614_s0 + $0x9] sm:$0x1] }
 0x1f8   : > { %v1253_v17 = vadd.f32 %v1252_v24, %v1251_v13  ;;  %1457 = vmatpush.msra.mxu0 %v2336_v36  ;;  %v1286_v36 = vmul.f32 %v1278_v4, %v2425_v33  ;;  %v1578_v33 = vmul.f32 %v1421_v35, %v2414_v23  ;;  %v2093_v13 = vld [vmem:[%s2614_s0 + $0x8] ss:$0 sm:$0xff]  ;;  %v2003_v24 = vld [vmem:[%s2614_s0 + $0xb] sm:$0x1] }
 0x1f9   : > { %v2132_v22 = vpop.eup %2131 }
 0x1fa   : > { %2040 = vmatpush.msk.msrb.mxu0 %vm684_vm0, %v1576_v1  ;;  %v1261_v27 = vmul.f32 %v2132_v22, %v2124_v31  ;;  %v1254_v18 = vrot.slane %v1253_v17, 1  ;;  %v1281_v31 = vpop.permute.xlu0 %1280  ;;  %v2002_v1 = vld [vmem:[%s2614_s0 + $0xa] sm:$0x1] }
 0x1fb   : > { %v1283_v38 = vperm.slane %v1281_v31, 0 }
 0x1fc   : > { %v2134_v21 = vpop.eup %2133  ;;  %v1255_v19 = vadd.f32 %v1254_v18, %v1253_v17  ;;  %2030 = vmatpush.msk.msrb.mxu1 %vm1312_vm6, %v1261_v27  ;;  %v2096_v17 = vld [vmem:[%s2614_s0 + $0xa] ss:$0 sm:$0xff] }
 0x1fd   : > { %v1262_v34 = vmul.f32 %v2134_v21, %v2126_v43  ;;  %2031 = vmatmul.msk.f32.vlgmr.msrb.gmra.mxu1 %vm1308_vm7, %v1285_v25  ;;  %2036 = vmatmul.msk.f32.vlgmr.msra.gmra.mxu0 %vm807_vm2, %v1419_v5  ;;  %v1287_v39 = vmul.f32 %v1283_v38, %v2447_v37 }
 0x1fe   : > { %2135 = vrcp.f32 %v1255_v19  ;;  %1479 = vmatpush.msra.mxu1 %v2352_v52 }
 0x1ff   : > { %2032 = vmatpush.msk.msrb.mxu2 %vm1312_vm6, %v1262_v34 }
 0x200   : > { %1480 = vmatpush.msra.mxu1 %v2354_v54  ;;  %2033 = vmatmul.msk.f32.vlgmr.msrb.gmra.mxu2 %vm1308_vm7, %v1286_v36  ;;  %v1422_v54 = vld [vmem:[%s2477_s25 + $0x6] sm:$0x3] }
 0x201   : > { %1502 = vmatpush.msra.mxu2 %v2327_v29  ;;  %v1579_v29 = vmul.f32 %v1422_v54, %v2441_v30 }
 0x202   : > { %2042 = vmatpush.msk.msrb.mxu1 %vm684_vm0, %v1577_v11 }
 0x203   : > { %1503 = vmatpush.msra.mxu2 %v2329_v32 }
 0x204   : > { %v2136_v52 = vpop.eup %2135 }
 0x205   : > { %2044 = vmatpush.msk.msrb.mxu2 %vm684_vm0, %v1578_v33  ;;  %v1263_v28 = vmul.f32 %v2136_v52, %v2128_v60  ;;  %2037 = vmatmul.msk.f32.vlgmr.msra.gmra.mxu1 %vm807_vm2, %v1420_v6 }
 0x207   : > { %2034 = vmatpush.msk.msrb.mxu3 %vm1312_vm6, %v1263_v28 }
 0x208   : > { %2035 = vmatmul.msk.f32.vlgmr.msrb.gmra.mxu3 %vm1308_vm7, %v1287_v39  ;;  %2038 = vmatmul.msk.f32.vlgmr.msra.gmra.mxu2 %vm807_vm2, %v1421_v35 }
 0x209   : > { %1525 = vmatpush.msra.mxu3 %v2348_v47 }
 0x20b   : > { %1526 = vmatpush.msra.mxu3 %v2350_v51 }
 0x20d   : > { %2046 = vmatpush.msk.msrb.mxu3 %vm684_vm0, %v1579_v29 }
 0x210   : > { %2039 = vmatmul.msk.f32.vlgmr.msra.gmra.mxu3 %vm807_vm2, %v1422_v54 }
 0x272   : > { %v2516_v32 = vpop.f32.mrf.mxu0 }
 0x27a   : > { %v2518_v23 = vpop.f32.mrf.mxu1  ;;  %v1459_v37 = vpop.f32.mrf.mxu0 }
 0x27b   : > { %v1532_v40 = vsel %vm1531_vm8, %v1459_v37, -inf }
 0x27c   : > { %1533 = vmax.xlane.f32.xlu2 %v1532_v40 }
 0x282   : > { %v1482_v8 = vpop.f32.mrf.mxu1 }
 0x283   : > { %v2521_v42 = vpop.f32.mrf.mxu2  ;;  %v1535_v47 = vsel %vm1531_vm8, %v1482_v8, -inf }
 0x284   : > { %1536 = vmax.xlane.f32.xlu2 %v1535_v47 }
 0x28b   : > { %v2524_v51 = vpop.f32.mrf.mxu3  ;;  %v1505_v30 = vpop.f32.mrf.mxu2 }
 0x28c   : > { %v1538_v43 = vsel %vm1531_vm8, %v1505_v30, -inf }
 0x28d   : > { %1539 = vmax.xlane.f32.xlu0 %v1538_v43 }
 0x293   : > { %v1528_v44 = vpop.f32.mrf.mxu3 }
 0x294   : > { %v1541_v12 = vsel %vm1531_vm8, %v1528_v44, -inf }
 0x295   : > { %1542 = vmax.xlane.f32.xlu1 %v1541_v12 }
 0x2ef   : > { %v1534_v45 = vpop.xlane.xlu2 %1533 }
 0x2f0   : > { %v1544_v46 = vsub.f32 %v1459_v37, %v1534_v45 }
 0x2f2   : > { %v1548_v48 = vmul.f32 1.442695, %v1544_v46 }
 0x2f4   : > { %2137 = vpow2.f32 %v1548_v48 }
 0x2f7   : > { %v1537_v53 = vpop.xlane.xlu2 %1536 }
 0x2f8   : > { %v1545_v57 = vsub.f32 %v1482_v8, %v1537_v53 }
 0x2fa   : > { %v2138_v49 = vpop.eup %2137  ;;  %v1550_v59 = vmul.f32 1.442695, %v1545_v57 }
 0x2fb   : > { %v1556_v50 = vsel %vm1531_vm8, %v2138_v49, 0.0 }
 0x2fc   : > { %1557 = vadd.xlane.f32.xlu2 %v1556_v50 }
 0x300   : > { %v1540_v55 = vpop.xlane.xlu0 %1539 }
 0x301   : > { %v1546_v56 = vsub.f32 %v1505_v30, %v1540_v55 }
 0x303   : > { %v1552_v58 = vmul.f32 1.442695, %v1546_v56 }
 0x305   : > { %2139 = vpow2.f32 %v1552_v58 }
 0x306   : > { %2141 = vpow2.f32 %v1550_v59 }
 0x308   : > { %v1543_v60 = vpop.xlane.xlu1 %1542 }
 0x309   : > { %v1547_v63 = vsub.f32 %v1528_v44, %v1543_v60 }
 0x30b   : > { %v2140_v2 = vpop.eup %2139  ;;  %v1554_v61 = vmul.f32 1.442695, %v1547_v63 }
 0x30c   : > { %v1562_v0 = vsel %vm1531_vm8, %v2140_v2, 0.0  ;;  %v2142_v3 = vpop.eup %2141 }
 0x30d   : > { %2143 = vpow2.f32 %v1554_v61  ;;  %1563 = vadd.xlane.f32.xlu0 %v1562_v0  ;;  %v1559_v5 = vsel %vm1531_vm8, %v2142_v3, 0.0 }
 0x313   : > { %v2144_v14 = vpop.eup %2143 }
 0x314   : > { %1289 = vperm.xlu2 %2084, %v2000_v7   ;;  %v1565_v62 = vsel %vm1531_vm8, %v2144_v14, 0.0 }
 0x315   : > { %1566 = vadd.xlane.f32.xlu1 %v1565_v62  ;;  %1560 = vadd.xlane.f32.xlu0 %v1559_v5 }
 0x31c   : > { %957 = vperm.xlu2 %2084, %v2094_v15  }
 0x329   : > { %1294 = vperm.xlu0 %2082, %v2001_v16  }
 0x32e   : > { %953 = vperm.xlu1 %2083, %v2093_v13  }
 0x331   : > { %1304 = vperm.xlu0 %2082, %v2003_v24  }
 0x336   : > { %1299 = vperm.xlu1 %2083, %v2002_v1  }
 0x339   : > { %965 = vperm.xlu0 %2082, %v2095_v26  }
 0x33e   : > { %961 = vperm.xlu1 %2083, %v2096_v17  }
 0x36f   : > { %v1558_v22 = vpop.xlane.xlu2 %1557 }
 0x370   : > { %2145 = vrcp.f32 %v1558_v22 }
 0x376   : > { %v2146_v4 = vpop.eup %2145 }
 0x377   : > { %v1572_v27 = vmul.f32 %v2146_v4, %v2138_v49  ;;  %v1290_v18 = vpop.permute.xlu2 %1289 }
 0x378   : > { %v1292_v25 = vperm.slane %v1290_v18, 0 }
 0x379   : > { %2041 = vmatmul.msk.f32.vlgmr.msrb.gmra.mxu0 %vm677_vm1, %v1572_v27 }
 0x37a   : > { %v1334_v21 = vadd.f32 %v2516_v32, %v1292_v25 }
 0x37c   : > { %1415 = vst.msk [vmem:[%s2561_s29] sm:$0x1] %vm1414_vm9, %v1334_v21 }
 0x37f   : > { %v958_v6 = vpop.permute.xlu2 %957 }
 0x380   : > { %v1012_v19 = vadd.f32 %v2460_v20, %v958_v6  ;;  %v1564_v34 = vpop.xlane.xlu0 %1563 }
 0x381   : > { %2147 = vrcp.f32 %v1564_v34 }
 0x382   : > { %1062 = vst.msk [vmem:[%s2571_s15 + $0x2] sm:$0x3] %vm1060_vm10, %v1012_v19 }
 0x387   : > { %v2148_v36 = vpop.eup %2147 }
 0x388   : > { %v1574_v11 = vmul.f32 %v2148_v36, %v2140_v2  ;;  %v1567_v31 = vpop.xlane.xlu1 %1566  ;;  %v1561_v35 = vpop.xlane.xlu0 %1560 }
 0x389   : > { %2149 = vrcp.f32 %v1567_v31 }
 0x38a   : > { %2151 = vrcp.f32 %v1561_v35  ;;  %2045 = vmatmul.msk.f32.vlgmr.msrb.gmra.mxu2 %vm677_vm1, %v1574_v11 }
 0x38f   : > { %v2150_v38 = vpop.eup %2149 }
 0x390   : > { %v2152_v33 = vpop.eup %2151  ;;  %v1575_v52 = vmul.f32 %v2150_v38, %v2144_v14 }
 0x391   : > { %v1573_v28 = vmul.f32 %v2152_v33, %v2142_v3 }
 0x392   : > { %2047 = vmatmul.msk.f32.vlgmr.msrb.gmra.mxu3 %vm677_vm1, %v1575_v52 }
 0x393   : > { %2043 = vmatmul.msk.f32.vlgmr.msrb.gmra.mxu1 %vm677_vm1, %v1573_v28 }
 0x39b   : > { %v1295_v20 = vpop.permute.xlu0 %1294 }
 0x39c   : > { %v1297_v39 = vperm.slane %v1295_v20, 0 }
 0x39e   : > { %v1360_v54 = vadd.f32 %v2518_v23, %v1297_v39 }
 0x3a0   : > { %1416 = vst.msk [vmem:[%s2561_s29 + $0x1] sm:$0x1] %vm1414_vm9, %v1360_v54  ;;  %v954_v29 = vpop.permute.xlu1 %953 }
 0x3a1   : > { %v989_v32 = vadd.f32 %v2458_v9, %v954_v29 }
 0x3a3   : > { %1061 = vst.msk [vmem:[%s2571_s15] sm:$0x3] %vm1060_vm10, %v989_v32  ;;  %v1305_v37 = vpop.permute.xlu0 %1304 }
 0x3a4   : > { %v1307_v40 = vperm.slane %v1305_v37, 0 }
 0x3a6   : > { %v1412_v8 = vadd.f32 %v2524_v51, %v1307_v40 }
 0x3a8   : > { %1418 = vst.msk [vmem:[%s2561_s29 + $0x3] sm:$0x1] %vm1414_vm9, %v1412_v8  ;;  %v1300_v47 = vpop.permute.xlu1 %1299 }
 0x3a9   : > { %v1302_v30 = vperm.slane %v1300_v47, 0 }
 0x3ab   : > { %v1386_v43 = vadd.f32 %v2521_v42, %v1302_v30  ;;  %v966_v23 = vpop.permute.xlu0 %965 }
 0x3ac   : > { %v1058_v44 = vadd.f32 %v2466_v10, %v966_v23 }
 0x3ad   : > { %1417 = vst.msk [vmem:[%s2561_s29 + $0x2] sm:$0x1] %vm1414_vm9, %v1386_v43 }
 0x3ae   : > { %1064 = vst.msk [vmem:[%s2571_s15 + $0x6] sm:$0x3] %vm1060_vm10, %v1058_v44 }
 0x3b0   : > { %v962_v9 = vpop.permute.xlu1 %961 }
 0x3b1   : > { %v1035_v12 = vadd.f32 %v2463_v41, %v962_v9 }
 0x3b3   : > { %1063 = vst.msk [vmem:[%s2571_s15 + $0x4] sm:$0x3] %vm1060_vm10, %v1035_v12 }
 0x3f6   : > { %v1603_v51 = vpop.f32.mrf.mxu0 }
 0x3f7   : > { %v1604_v45 = vadd.f32 %v1603_v51, %v954_v29 }
 0x3f9   : > { %1684 = vst.msk [vmem:[%s608_s17] sm:$0x3] %vm1060_vm10, %v1604_v45 }
 0x40d   : > { %v1655_v42 = vpop.f32.mrf.mxu2 }
 0x40e   : > { %v1656_v46 = vadd.f32 %v1655_v42, %v962_v9 }
 0x410   : > { %1686 = vst.msk [vmem:[%s608_s17 + $0x4] sm:$0x3] %vm1060_vm10, %v1656_v46  ;;  %v1629_v10 = vpop.f32.mrf.mxu1 }
 0x411   : > { %v1630_v48 = vadd.f32 %v1629_v10, %v958_v6 }
 0x413   : > { %1685 = vst.msk [vmem:[%s608_s17 + $0x2] sm:$0x3] %vm1060_vm10, %v1630_v48 }
 0x415   : > { %v1681_v49 = vpop.f32.mrf.mxu3 }
 0x416   : > { %v1682_v41 = vadd.f32 %v1681_v49, %v966_v23 }
 0x418   : > { %1687 = vst.msk [vmem:[%s608_s17 + $0x6] sm:$0x3] %vm1060_vm10, %v1682_v41 }
 0x419 PF: > { %s20_s11 = sadd.s32 1, %s2175_s11   ;;  %s2624_s30 = smov %s2171_s10 }
 0x41a   : > { %p17_p5 = scmp.ge.s32.totalorder %s20_s11, 4   ;;  %s2625_s10 = smov %s2627_s12 }
 0x41c   :  { %19 = sbr.rel (!%p17_p5) target bundleno = 2 (0x2), region = 122 }

</bundles_post_ra>
